<compile_context>
chip_gen: v7x
topology: tpu7x:2x2x1
jax: 0.10.0
libtpu: 0.0.40
codegen_flags: <defaults>
</compile_context>

<pallas_src>
import jax
import jax.numpy as jnp
import numpy as np
from jax.experimental import pallas as pl
from jax.experimental.pallas import tpu as pltpu


# -----------------------------------------------------------------------------
# Kernel: one grid step per layer. Scratch:
#   x_ref    : (B, H) f32 VMEM  — running activation, persists across layers
#   done_ref : (1,)   i32 SMEM  — early-exit flag, persists across layers
# -----------------------------------------------------------------------------
def _make_kernel(layer_threshold: float):
    def kernel(x_in_ref, wT_ref, b_ref, cw_ref, cb_ref, owT_ref, ob_ref,
               out_ref, x_ref, done_ref):
        i = pl.program_id(0)
        n = pl.num_programs(0)

        # ---- init (first layer only): load x, clear the exit flag ----------
        @pl.when(i == 0)
        def _init():
            x_ref[...] = x_in_ref[...].astype(jnp.float32)
            done_ref[0] = jnp.int32(0)

        # ---- layer i: skipped entirely once the exit condition has fired ---
        @pl.when(done_ref[0] == 0)
        def _layer():
            x = x_ref[...]                                   # f32 (B, H)

            # hidden Linear_i + ReLU : bf16 MXU matmul, f32 accumulate
            h = jnp.dot(x.astype(jnp.bfloat16), wT_ref[0],
                        preferred_element_type=jnp.float32)  # (B, H)
            h = jnp.maximum(h + b_ref[0], 0.0)               # bias (1, H) bcast

            # confidence head on VPU/XLU: row-vector multiply + lane reduce
            logits = jnp.sum(h * cw_ref[0], axis=-1, keepdims=True) + cb_ref[0]
            conf_mean = jnp.mean(jax.nn.sigmoid(logits))     # scalar

            # PyTorch order: x is updated by layer i, THEN the break check runs.
            x_ref[...] = h
            done_ref[0] = (conf_mean > layer_threshold).astype(jnp.int32)

        # ---- final output projection (runs once, on the last grid step) ----
        @pl.when(i == n - 1)
        def _project():
            out = jnp.dot(x_ref[...], owT_ref[...],
                          preferred_element_type=jnp.float32)
            out_ref[...] = (out + ob_ref[...]).astype(out_ref.dtype)

    return kernel


def dynamic_reward_head_pallas(x, params, *, max_layers, layer_threshold,
                               vmem_limit_bytes=None):
    """x: (B, H) f32. params: dict of stacked weights (see init_params)."""
    B, H = x.shape
    L = max_layers
    O = params["owT"].shape[1]
    assert params["wT"].shape == (L, H, H)

    kernel = _make_kernel(float(layer_threshold))

    grid_spec = pltpu.PrefetchScalarGridSpec(
        num_scalar_prefetch=0,
        grid=(L,),
        in_specs=[
            pl.BlockSpec((B, H), lambda i: (0, 0)),        # x (resident)
            pl.BlockSpec((1, H, H), lambda i: (i, 0, 0)),  # wT: one layer/step
            pl.BlockSpec((1, 1, H), lambda i: (i, 0, 0)),  # b : one layer/step
            pl.BlockSpec((1, 1, H), lambda i: (i, 0, 0)),  # cw: one layer/step
            pl.BlockSpec((1, 1, 1), lambda i: (i, 0, 0)),  # cb: one layer/step
            pl.BlockSpec((H, O), lambda i: (0, 0)),        # owT (resident)
            pl.BlockSpec((1, O), lambda i: (0, 0)),        # ob  (resident)
        ],
        out_specs=pl.BlockSpec((B, O), lambda i: (0, 0)),
        scratch_shapes=[
            pltpu.VMEM((B, H), jnp.float32),   # persistent activation x
            pltpu.SMEM((1,), jnp.int32),       # early-exit "done" flag
        ],
    )

    return pl.pallas_call(
        kernel,
        out_shape=jax.ShapeDtypeStruct((B, O), jnp.float32),
        grid_spec=grid_spec,
        compiler_params=pltpu.CompilerParams(
            dimension_semantics=("arbitrary",),     # layers are sequential
            vmem_limit_bytes=vmem_limit_bytes,      # raise for large H configs
        ),
    )(
        x,
        params["wT"],   # (L, H, H) bf16  hidden Linear weights, pre-transposed
        params["b"],    # (L, 1, H) f32   hidden Linear biases
        params["cw"],   # (L, 1, H) f32   confidence Linear weights (row vectors)
        params["cb"],   # (L, 1, 1) f32   confidence Linear biases
        params["owT"],  # (H, O)    f32   output Linear weight, pre-transposed
        params["ob"],   # (1, O)    f32   output Linear bias
    )


# -----------------------------------------------------------------------------
# Deterministic parameter init (PyTorch nn.Linear default: U(-1/sqrt(fan_in), +))
# -----------------------------------------------------------------------------
def init_params(key, hidden_size, num_objectives, max_layers):
    H, O, L = hidden_size, num_objectives, max_layers
    k_h = 1.0 / np.sqrt(H)
    keys = jax.random.split(key, 6)

    wT = jax.random.uniform(keys[0], (L, H, H), jnp.float32, -k_h, k_h)
    wT = wT.astype(jnp.bfloat16)                      # bf16 weights for the MXU
    b = jax.random.uniform(keys[1], (L, 1, H), jnp.float32, -k_h, k_h)
    cw = jax.random.uniform(keys[2], (L, 1, H), jnp.float32, -k_h, k_h)
    cb = jax.random.uniform(keys[3], (L, 1, 1), jnp.float32, -k_h, k_h)
    owT = jax.random.uniform(keys[4], (H, O), jnp.float32, -k_h, k_h)
    ob = jax.random.uniform(keys[5], (1, O), jnp.float32, -k_h, k_h)
    return dict(wT=wT, b=b, cw=cw, cb=cb, owT=owT, ob=ob)


# -----------------------------------------------------------------------------
# Pure-JAX reference (host-side Python loop, mirrors the PyTorch break exactly,
# using the same bf16-weight / f32-accumulate arithmetic as the kernel).
# -----------------------------------------------------------------------------
def reference(x, params, *, max_layers, layer_threshold):
    xc = x.astype(jnp.float32)
    for i in range(max_layers):
        h = jnp.dot(xc.astype(jnp.bfloat16), params["wT"][i],
                    preferred_element_type=jnp.float32)
        h = jnp.maximum(h + params["b"][i], 0.0)
        logits = jnp.sum(h * params["cw"][i], axis=-1, keepdims=True) + params["cb"][i]
        conf_mean = float(jnp.mean(jax.nn.sigmoid(logits)))
        xc = h
        if conf_mean > layer_threshold or i == max_layers - 1:
            break
    return jnp.dot(xc, params["owT"], preferred_element_type=jnp.float32) + params["ob"]


if __name__ == "__main__":
    hidden_size = 128        # lane-aligned (multiple of 128)
    num_objectives = 1
    max_layers = 5
    layer_threshold = 0.5
    batch = 8                # sublane-aligned

    key = jax.random.PRNGKey(0)
    k_x, k_p = jax.random.split(key)
    x = jax.random.normal(k_x, (batch, hidden_size), jnp.float32)
    params = init_params(k_p, hidden_size, num_objectives, max_layers)

    out = dynamic_reward_head_pallas(
        x, params, max_layers=max_layers, layer_threshold=layer_threshold
    )
    out = jax.block_until_ready(out)

    ref = reference(x, params, max_layers=max_layers, layer_threshold=layer_threshold)
    np.testing.assert_allclose(np.asarray(out), np.asarray(ref), rtol=2e-2, atol=2e-2)

    print("KERNEL_OK")
</pallas_src>

<mosaic_0001>
module attributes {stable_mosaic.version = 11 : i64} {
  func.func @kernel(%arg0: i32, %arg1: memref<8x128xf32, #tpu.memory_space<vmem>>, %arg2: memref<1x128x128xbf16, #tpu.memory_space<vmem>>, %arg3: memref<1x1x128xf32, #tpu.memory_space<vmem>>, %arg4: memref<1x1x128xf32, #tpu.memory_space<vmem>>, %arg5: memref<1x1x1xf32, #tpu.memory_space<vmem>>, %arg6: memref<128x1xf32, #tpu.memory_space<vmem>>, %arg7: memref<1x1xf32, #tpu.memory_space<vmem>>, %arg8: memref<8x1xf32, #tpu.memory_space<vmem>>, %arg9: memref<8x128xf32, #tpu.memory_space<vmem>>, %arg10: memref<1xi32, #tpu.memory_space<smem>>) attributes {dimension_semantics = [#tpu.dimension_semantics<arbitrary>], iteration_bounds = array<i64: 5>, scalar_prefetch = 0 : i64, scratch_operands = 2 : i64, tpu.core_type = #tpu.core_type<tc>, window_params = [{pipeline_mode = #tpu.pipeline_mode<synchronous>, transform_indices = @transform_0, window_bounds = array<i64: 8, 128>}, {transform_indices = @transform_1, window_bounds = array<i64: 1, 128, 128>}, {transform_indices = @transform_2, window_bounds = array<i64: 1, 1, 128>}, {transform_indices = @transform_3, window_bounds = array<i64: 1, 1, 128>}, {transform_indices = @transform_4, window_bounds = array<i64: 1, 1, 1>}, {pipeline_mode = #tpu.pipeline_mode<synchronous>, transform_indices = @transform_5, window_bounds = array<i64: 128, 1>}, {pipeline_mode = #tpu.pipeline_mode<synchronous>, transform_indices = @transform_6, window_bounds = array<i64: 1, 1>}, {pipeline_mode = #tpu.pipeline_mode<synchronous>, transform_indices = @transform_7, window_bounds = array<i64: 8, 1>}]} {
    %c0_i32 = arith.constant 0 : i32
    %0 = arith.cmpi eq, %arg0, %c0_i32 : i32
    %1 = arith.extui %0 : i1 to i32
    %c0_i32_0 = arith.constant 0 : i32
    %2 = arith.cmpi ne, %1, %c0_i32_0 : i32
    scf.if %2 {
      %c0_4 = arith.constant 0 : index
      %c0_5 = arith.constant 0 : index
      %10 = vector.load %arg1[%c0_4, %c0_5] : memref<8x128xf32, #tpu.memory_space<vmem>>, vector<8x128xf32>
      %c0_6 = arith.constant 0 : index
      %c0_7 = arith.constant 0 : index
      %11 = vector.load %arg9[%c0_6, %c0_7] : memref<8x128xf32, #tpu.memory_space<vmem>>, vector<8x128xf32>
      tpu.vector_store %arg9[%c0_6, %c0_7], %10 {strides = array<i32>} : memref<8x128xf32, #tpu.memory_space<vmem>>, vector<8x128xf32>,
      %c0_i32_8 = arith.constant 0 : i32
      %c0_9 = arith.constant 0 : index
      %12 = memref.load %arg10[%c0_9] : memref<1xi32, #tpu.memory_space<smem>>
      memref.store %c0_i32_8, %arg10[%c0_9] : memref<1xi32, #tpu.memory_space<smem>>
    } else {
    }
    %c0 = arith.constant 0 : index
    %3 = memref.load %arg10[%c0] : memref<1xi32, #tpu.memory_space<smem>>
    %c0_i32_1 = arith.constant 0 : i32
    %4 = arith.cmpi eq, %3, %c0_i32_1 : i32
    %5 = arith.extui %4 : i1 to i32
    %c0_i32_2 = arith.constant 0 : i32
    %6 = arith.cmpi ne, %5, %c0_i32_2 : i32
    scf.if %6 {
      %c0_4 = arith.constant 0 : index
      %c0_5 = arith.constant 0 : index
      %10 = vector.load %arg9[%c0_4, %c0_5] : memref<8x128xf32, #tpu.memory_space<vmem>>, vector<8x128xf32>
      %11 = arith.truncf %10 : vector<8x128xf32> to vector<8x128xbf16>
      %c0_6 = arith.constant 0 : index
      %c0_7 = arith.constant 0 : index
      %c0_8 = arith.constant 0 : index
      %12 = vector.load %arg2[%c0_6, %c0_7, %c0_8] : memref<1x128x128xbf16, #tpu.memory_space<vmem>>, vector<1x128x128xbf16>
      %13 = vector.shape_cast %12 : vector<1x128x128xbf16> to vector<128x128xbf16>
      %cst = arith.constant dense<0.000000e+00> : vector<8x128xf32>
      %14 = tpu.matmul %11, %13, %cst {dimension_numbers = #tpu.dot_dimension_numbers<[1], [0], [0], [1], [0, 0, 1, 1], [], []>} : vector<8x128xbf16>, vector<128x128xbf16>, vector<8x128xf32> -> vector<8x128xf32>
      %c0_9 = arith.constant 0 : index
      %c0_10 = arith.constant 0 : index
      %c0_11 = arith.constant 0 : index
      %15 = vector.load %arg3[%c0_9, %c0_10, %c0_11] : memref<1x1x128xf32, #tpu.memory_space<vmem>>, vector<1x1x128xf32>
      %16 = vector.shape_cast %15 : vector<1x1x128xf32> to vector<1x128xf32>
      %17 = vector.broadcast %16 : vector<1x128xf32> to vector<8x128xf32>
      %18 = arith.addf %14, %17 : vector<8x128xf32>
      %cst_12 = arith.constant 0.000000e+00 : f32
      %19 = vector.broadcast %cst_12 : f32 to vector<8x128xf32>
      %20 = arith.maximumf %18, %19 : vector<8x128xf32>
      %c0_13 = arith.constant 0 : index
      %c0_14 = arith.constant 0 : index
      %c0_15 = arith.constant 0 : index
      %21 = vector.load %arg4[%c0_13, %c0_14, %c0_15] : memref<1x1x128xf32, #tpu.memory_space<vmem>>, vector<1x1x128xf32>
      %22 = vector.shape_cast %21 : vector<1x1x128xf32> to vector<1x128xf32>
      %23 = vector.broadcast %22 : vector<1x128xf32> to vector<8x128xf32>
      %24 = arith.mulf %20, %23 : vector<8x128xf32>
      %cst_16 = arith.constant dense<0.000000e+00> : vector<8xf32>
      %25 = vector.multi_reduction <add>, %24, %cst_16 [1] : vector<8x128xf32> to vector<8xf32>
      %26 = vector.shape_cast %25 : vector<8xf32> to vector<8x1xf32>
      %c0_17 = arith.constant 0 : index
      %c0_18 = arith.constant 0 : index
      %c0_19 = arith.constant 0 : index
      %27 = vector.load %arg5[%c0_17, %c0_18, %c0_19] : memref<1x1x1xf32, #tpu.memory_space<vmem>>, vector<1x1x1xf32>
      %28 = vector.shape_cast %27 : vector<1x1x1xf32> to vector<1x1xf32>
      %29 = vector.broadcast %28 : vector<1x1xf32> to vector<8x1xf32>
      %30 = arith.addf %26, %29 : vector<8x1xf32>
      %31 = arith.negf %30 : vector<8x1xf32>
      %32 = math.exp %31 : vector<8x1xf32>
      %cst_20 = arith.constant 1.000000e+00 : f32
      %33 = vector.broadcast %cst_20 : f32 to vector<8x1xf32>
      %34 = arith.addf %33, %32 : vector<8x1xf32>
      %35 = arith.divf %33, %34 : vector<8x1xf32>
      %36 = vector.shape_cast %35 : vector<8x1xf32> to vector<1x8x1xf32>
      %cst_21 = arith.constant dense<0.000000e+00> : vector<1xf32>
      %37 = vector.multi_reduction <add>, %36, %cst_21 [1, 2] : vector<1x8x1xf32> to vector<1xf32>
      %38 = vector.shape_cast %37 : vector<1xf32> to vector<1x1x1xf32>
      %39 = vector.extract %38[0, 0, 0] : f32 from vector<1x1x1xf32>
      %cst_22 = arith.constant 8.000000e+00 : f32
      %40 = arith.divf %39, %cst_22 : f32
      %c0_23 = arith.constant 0 : index
      %c0_24 = arith.constant 0 : index
      %41 = vector.load %arg9[%c0_23, %c0_24] : memref<8x128xf32, #tpu.memory_space<vmem>>, vector<8x128xf32>
      tpu.vector_store %arg9[%c0_23, %c0_24], %20 {strides = array<i32>} : memref<8x128xf32, #tpu.memory_space<vmem>>, vector<8x128xf32>,
      %cst_25 = arith.constant 5.000000e-01 : f32
      %42 = arith.cmpf ogt, %40, %cst_25 : f32
      %43 = arith.extui %42 : i1 to i32
      %c0_26 = arith.constant 0 : index
      %44 = memref.load %arg10[%c0_26] : memref<1xi32, #tpu.memory_space<smem>>
      memref.store %43, %arg10[%c0_26] : memref<1xi32, #tpu.memory_space<smem>>
    } else {
    }
    %c4_i32 = arith.constant 4 : i32
    %7 = arith.cmpi eq, %arg0, %c4_i32 : i32
    %8 = arith.extui %7 : i1 to i32
    %c0_i32_3 = arith.constant 0 : i32
    %9 = arith.cmpi ne, %8, %c0_i32_3 : i32
    scf.if %9 {
      %c0_4 = arith.constant 0 : index
      %c0_5 = arith.constant 0 : index
      %10 = vector.load %arg9[%c0_4, %c0_5] : memref<8x128xf32, #tpu.memory_space<vmem>>, vector<8x128xf32>
      %c0_6 = arith.constant 0 : index
      %c0_7 = arith.constant 0 : index
      %11 = vector.load %arg6[%c0_6, %c0_7] : memref<128x1xf32, #tpu.memory_space<vmem>>, vector<128x1xf32>
      %cst = arith.constant dense<0.000000e+00> : vector<8x1xf32>
      %12 = tpu.matmul %10, %11, %cst {dimension_numbers = #tpu.dot_dimension_numbers<[1], [0], [0], [1], [0, 0, 1, 1], [], []>} : vector<8x128xf32>, vector<128x1xf32>, vector<8x1xf32> -> vector<8x1xf32>
      %c0_8 = arith.constant 0 : index
      %c0_9 = arith.constant 0 : index
      %13 = vector.load %arg7[%c0_8, %c0_9] : memref<1x1xf32, #tpu.memory_space<vmem>>, vector<1x1xf32>
      %14 = vector.broadcast %13 : vector<1x1xf32> to vector<8x1xf32>
      %15 = arith.addf %12, %14 : vector<8x1xf32>
      %c0_10 = arith.constant 0 : index
      %c0_11 = arith.constant 0 : index
      %16 = vector.load %arg8[%c0_10, %c0_11] : memref<8x1xf32, #tpu.memory_space<vmem>>, vector<8x1xf32>
      tpu.vector_store %arg8[%c0_10, %c0_11], %15 {strides = array<i32>} : memref<8x1xf32, #tpu.memory_space<vmem>>, vector<8x1xf32>,
    } else {
    }
    return
  }
  func.func @transform_0(%arg0: i32) -> (i32, i32) {
    %c0_i32 = arith.constant 0 : i32
    %c0_i32_0 = arith.constant 0 : i32
    %c0_i32_1 = arith.constant 0 : i32
    return %c0_i32, %c0_i32_0 : i32, i32
  }
  func.func @transform_1(%arg0: i32) -> (i32, i32, i32) {
    %c0_i32 = arith.constant 0 : i32
    %c0_i32_0 = arith.constant 0 : i32
    %c0_i32_1 = arith.constant 0 : i32
    return %arg0, %c0_i32, %c0_i32_0 : i32, i32, i32
  }
  func.func @transform_2(%arg0: i32) -> (i32, i32, i32) {
    %c0_i32 = arith.constant 0 : i32
    %c0_i32_0 = arith.constant 0 : i32
    %c0_i32_1 = arith.constant 0 : i32
    return %arg0, %c0_i32, %c0_i32_0 : i32, i32, i32
  }
  func.func @transform_3(%arg0: i32) -> (i32, i32, i32) {
    %c0_i32 = arith.constant 0 : i32
    %c0_i32_0 = arith.constant 0 : i32
    %c0_i32_1 = arith.constant 0 : i32
    return %arg0, %c0_i32, %c0_i32_0 : i32, i32, i32
  }
  func.func @transform_4(%arg0: i32) -> (i32, i32, i32) {
    %c0_i32 = arith.constant 0 : i32
    %c0_i32_0 = arith.constant 0 : i32
    %c0_i32_1 = arith.constant 0 : i32
    return %arg0, %c0_i32, %c0_i32_0 : i32, i32, i32
  }
  func.func @transform_5(%arg0: i32) -> (i32, i32) {
    %c0_i32 = arith.constant 0 : i32
    %c0_i32_0 = arith.constant 0 : i32
    %c0_i32_1 = arith.constant 0 : i32
    return %c0_i32, %c0_i32_0 : i32, i32
  }
  func.func @transform_6(%arg0: i32) -> (i32, i32) {
    %c0_i32 = arith.constant 0 : i32
    %c0_i32_0 = arith.constant 0 : i32
    %c0_i32_1 = arith.constant 0 : i32
    return %c0_i32, %c0_i32_0 : i32, i32
  }
  func.func @transform_7(%arg0: i32) -> (i32, i32) {
    %c0_i32 = arith.constant 0 : i32
    %c0_i32_0 = arith.constant 0 : i32
    %c0_i32_1 = arith.constant 0 : i32
    return %c0_i32, %c0_i32_0 : i32, i32
  }
}

</mosaic_0001>

<bundles_post_ra>
// kernel: tpu_custom_call.1
= control target key start
LH: loop header
LB: loop body
LE: loop exit
PB: predicated region body
PF: predicated region fallthrough
CT: control target
= control target key end

     0   :  { %s1176_s0 = inlined_call_operand.vmem [shape: f32[8,128], index: 0, kind: input, shape index: {}]   ;;  %s1177_s1 = inlined_call_operand.hbm [shape: bf16[5,128,128], index: 1, kind: input, shape index: {}]   ;;  %s1178_s2 = inlined_call_operand.vmem [shape: f32[5,1,128], index: 2, kind: input, shape index: {}]   ;;  %s1179_s3 = inlined_call_operand.vmem [shape: f32[5,1,128], index: 3, kind: input, shape index: {}]   ;;  %s1180_s4 = inlined_call_operand.vmem [shape: f32[5,1,1], index: 4, kind: input, shape index: {}]   ;;  %s1181_s5 = inlined_call_operand.vmem [shape: f32[128,1], index: 5, kind: input, shape index: {}]   ;;  %s1182_s6 = inlined_call_operand.<no memory space> [shape: f32[1,1], index: 6, kind: input, shape index: {}]   ;;  %s1183_s7 = inlined_call_operand.vmem [shape: f32[8,1], index: 7, kind: output, shape index: {}]  }
   0x1   :  { %v12_v0 = vstv %s1182_s6 }
   0x2   :  { %13 = vst [vmem:[#allocation4] sm:$0x1] %v12_v0 }
   0x3   :  { %14 = vsyncpa [#allocation6], 0 }
   0x4   :  { %16 = vsyncpa [#allocation6 + $0x1], 0  ;;  %s976_s26 = smov 0   ;;  %s978_s27 = smov 0  }
   0x5   :  { %s980_s28 = smov 0   ;;  %s982_s29 = smov 0  }
   0x6 LB: > { %s995_s6 = sadd.s32 4294967295, %s922_s29   ;;  %s998_s30 = sadd.s32 1, %s922_s29   ;;  %s922_s29 = sphi %s982_s29, %s1190_s29   ;;  %s918_s28 = sphi %s980_s28, %s1189_s28   ;;  %s914_s27 = sphi %s978_s27, %s1188_s27   ;;  %s910_s26 = sphi %s976_s26, %s1187_s26  }
   0x7   : > { %s47_s8 = ssub.s32 %s922_s29, %s998_s30  ;;  %s50_s9 = sadd.s32 1, %s918_s28 }
   0x8   : > { %p48_p0 = scmp.eq.s32.totalorder %s47_s8, 0  ;;  %p57_p1 = scmp.ne.s32.totalorder %s918_s28, %s914_s27 }
   0x9   : > { %p58_p2 = scmp.eq.s32.totalorder %s922_s29, 0  ;;  %p63_p3 = scmp.ne.s32.totalorder %s914_s27, %s910_s26 }
   0xa   : > { %s1008_s10 = scalar_select %p48_p0, %s918_s28, %s50_s9  }
   0xb   : > { %p59_p4 = por %p58_p2, %p57_p1  ;;  %p64_p5 = scmp.eq.s32.totalorder %s995_s6, 0 }
   0xc   : > { %p805_p6 = scmp.lt.s32.totalorder %s922_s29, 5  ;;  %s237_s12 = sand.u32 1, %s918_s28  }
   0xd   : > { %p1012_p7 = por %p64_p5, %p63_p3  ;;  %s668_s13 = sshll.u32 %s237_s12, 6 }
   0xe   : > { %s691_s14 = sshll.u32 %s922_s29, 10  ;;  %s241_s18 = scalar_lea.vmem [#allocation5], %s668_s13 }
   0xf   : > { %s1021_s17 = scalar_lea.hbm %s1177_s1, %s691_s14  ;;  %s248_s19 = sshll.u32 %s241_s18, 4  ;;  %s1023_s19 = int_to_ptr.vmem [resolvable:$true] %s248_s19 }
  0x10   : > { %p1025_p8 = pnand %p805_p6, %p59_p4  ;;  %s1030_s21 = scalar_lea.sflag [#allocation6], %s237_s12 }
  0x11   : > { %s858_s22 = scalar_lea.hbm %s1021_s17, 1024  ;;  %s863_s25 = scalar_lea.hbm %s1177_s1, 5120 }
  0x12   : > { %p859_p10 = scmp.ne.s32.totalorder %s1021_s17, %s858_s22  ;;  %p860_p11 = pneg %p1025_p8 }
  0x13   : > { %p864_p0 = scmp.lt.u32.totalorder %s1021_s17, %s1177_s1  ;;  %p865_p1 = scmp.lt.u32.totalorder %s863_s25, %s858_s22 }
  0x14   : > { %p861_p12 = pnand %p860_p11, %p859_p10  ;;  %p867_p3 = scmp.lt.u32.totalorder %s858_s22, %s1021_s17 }
  0x15   : > { %p866_p2 = por %p865_p1, %p864_p0 }
  0x16   : > { %p862_p13 = pneg %p861_p12 }
  0x17   : > { %p868_p4 = por %p867_p3, %p866_p2 }
  0x19   : > { %p869_p5 = pnand %p868_p4, %p862_p13 }
  0x1b   : > { %872 = shalt.err (!%p869_p5)
}
  0x1c   : > { %s873_s9 = scalar_lea.vmem %s1023_s19, 1024  ;;  %s924_s12 = smov [#allocation5]  }
  0x1d   : > { %p874_p6 = scmp.ne.s32.totalorder %s1023_s19, %s873_s9  ;;  %s878_s13 = sshll.u32 %s924_s12, 4  ;;  %s879_s13 = int_to_ptr.vmem [resolvable:$false] %s878_s13 }
  0x1e   : > { %s880_s14 = scalar_lea.vmem %s879_s13, 2048  ;;  %p881_p9 = scmp.lt.s32.totalorder %s1023_s19, %s879_s13 }
  0x1f   : > { %p876_p10 = pnand %p874_p6, %p860_p11  ;;  %p882_p0 = scmp.lt.s32.totalorder %s880_s14, %s873_s9 }
  0x21   : > { %p877_p12 = pneg %p876_p10  ;;  %p883_p1 = por %p882_p0, %p881_p9 }
  0x23   : > { %p884_p2 = pnand %p883_p1, %p877_p12 }
  0x25   : > { %887 = shalt.err (!%p884_p2)
}
  0x26   : > { %s925_s15 = smov 64   ;;  %s926_s16 = smov 4  }
  0x27   : > { %804 = dma.hbm_to_vmem [thread:$0]  (!%p1025_p8), %s1021_s17, 1024, %s1023_s19, %s1030_s21, %s925_s15, %s925_s15, %s926_s16  }
  0x28   : > { %p274_p11 = scmp.lt.s32.totalorder %s922_s29, 6  ;;  %p1186_p13 = scmp.ge.s32.totalorder %s922_s29, 1 }
  0x2a   : > { %p275_p3 = pnand %p1186_p13, %p274_p11 }
  0x2b   : > { %s280_s18 = sand.u32 (!%p275_p3), 1, %s914_s27  }
  0x2c   : > { %278 = sbr.rel (%p275_p3) target bundleno = 952 (0x3b8), region = 48  ;;  %s672_s22 = sshll.u32 (!%p275_p3), %s280_s18, 6 }
  0x2d   : > { %s281_s23 = scalar_lea.sflag (!%p275_p3), [#allocation6], %s280_s18  ;;  %s1062_s24 = scalar_lea.vmem (!%p275_p3), [#allocation5], %s672_s22 }
  0x33   : > { %905 = dma.done.wait (%p1012_p7), %s281_s23, 1024  }
  0x34   : > { %907 = vsyncadd (%p1012_p7), %s281_s23, 4294966272  ;;  %p319_p9 = scmp.lt.s32.totalorder %s995_s6, 4  ;;  %p673_p7 = scmp.ne.s32.totalorder %s995_s6, 0 }
  0x35   : > { %v333_v1 = vld [vmem:[%s1176_s0] sm:$0xff] (!%p673_p7)  ;;  %s927_s14 = smov (!%p673_p7), 0  }
  0x36   : > { %s1070_s17 = scalar_select %p319_p9, %s995_s6, 4 }
  0x37   : > { %332 = sbr.rel (%p673_p7) target bundleno = 62 (0x3e), region = 56  ;;  %334 = vst [vmem:[#allocation2] sm:$0xff] (!%p673_p7), %v333_v1  ;;  %336 = sst [smem:[#allocation3]] (!%p673_p7), %s927_s14 }
  0x38   : > { %s321_s20 = scalar_lea.vmem %s1178_s2, %s1070_s17  ;;  %s324_s26 = scalar_lea.vmem %s1179_s3, %s1070_s17 }
  0x39   : > { %s327_s11 = scalar_lea.vmem %s1180_s4, %s1070_s17 }
  0x3e PF: > { %s337_s15 = sld [smem:[#allocation3]] }
  0x44   : > { %p674_p8 = scmp.ne.s32.totalorder %s337_s15, 0 }
  0x45   : > { %v846_v2 = vld [vmem:[%s1062_s24] sm:$0xff] (!%p674_p8)   ;;  %v928_v3 = vmov (!%p674_p8), 0.0   ;;  %v847_v4 = vld [vmem:[%s1062_s24 + $0x8] sm:$0xff] (!%p674_p8)   ;;  %vm929_vm0 = vmmov (!%p674_p8), 0   ;;  %v848_v5 = vld [vmem:[%s1062_s24 + $0x10] sm:$0xff] (!%p674_p8)   ;;  %vm480_vm1 = vcmask (!%p674_p8), 7168  }
  0x46   : > { %341 = sbr.rel (%p674_p8) target bundleno = 702 (0x2be), region = 60  ;;  %718 = vmatprep.subr.bf16.mxu0 (!%p674_p8), %v928_v3  ;;  %734 = vmatprep.mubr.msk.bf16.mxu0 (!%p674_p8), %vm929_vm0, %v928_v3  ;;  %v849_v6 = vld [vmem:[%s1062_s24 + $0x18] sm:$0xff] (!%p674_p8)   ;;  %v850_v7 = vld [vmem:[%s1062_s24 + $0x20] sm:$0xff] (!%p674_p8)   ;;  %v851_v8 = vld [vmem:[%s1062_s24 + $0x28] sm:$0xff] (!%p674_p8)  }
  0x47   : > { %719 = vmatpush3.bf16.msra.mxu0 (!%p674_p8), %v846_v2  ;;  %v852_v9 = vld [vmem:[%s1062_s24 + $0x30] sm:$0xff] (!%p674_p8)   ;;  %v853_v10 = vld [vmem:[%s1062_s24 + $0x38] sm:$0xff] (!%p674_p8)  }
  0x48   : > { %720 = vmatprep.subr.bf16.mxu0 (!%p674_p8), %v928_v3  ;;  %v342_v11 = vld [vmem:[#allocation2] sm:$0xff] (!%p674_p8) }
  0x49   : > { %v343_v12 = vpack.c.bf16 (!%p674_p8), %v342_v11, %v342_v11  ;;  %v675_v13 = vld [vmem:[%s321_s20] ss:$0 sm:$0xff] (!%p674_p8) }
  0x4a   : > { %v684_v18 = vld [vmem:[%s324_s26] ss:$0 sm:$0xff] (!%p674_p8) }
  0x4b   : > { %721 = vmatpush3.bf16.msra.mxu0 (!%p674_p8), %v847_v4  ;;  %v685_v22 = vld [vmem:[%s327_s11] ss:$0 sm:$0xff] (!%p674_p8) }
  0x4c   : > { %722 = vmatprep.subr.bf16.mxu0 (!%p674_p8), %v928_v3 }
  0x4f   : > { %723 = vmatpush3.bf16.msra.mxu0 %v848_v5 }
  0x50   : > { %724 = vmatprep.subr.bf16.mxu0 %v928_v3 }
  0x53   : > { %725 = vmatpush3.bf16.msra.mxu0 %v849_v6 }
  0x54   : > { %726 = vmatprep.subr.bf16.mxu0 %v928_v3 }
  0x57   : > { %727 = vmatpush3.bf16.msra.mxu0 %v850_v7 }
  0x58   : > { %728 = vmatprep.subr.bf16.mxu0 %v928_v3 }
  0x5b   : > { %729 = vmatpush3.bf16.msra.mxu0 %v851_v8 }
  0x5c   : > { %730 = vmatprep.subr.bf16.mxu0 %v928_v3 }
  0x5f   : > { %731 = vmatpush3.bf16.msra.mxu0 %v852_v9 }
  0x60   : > { %732 = vmatprep.subr.bf16.mxu0 %v928_v3 }
  0x63   : > { %733 = vmatpush3.bf16.msra.mxu0 %v853_v10 }
  0x66   : > { %735 = vmatmul.mubr.bf16.vlgmr.msra.gmra.mrb[0].mxu0 %v343_v12 }
 0x139   : > { %v449_v14 = vpop.f32.mrb[0].mxu0 }
 0x13a   : > { %v450_v15 = vadd.f32 %v675_v13, %v449_v14  ;;  %v736_v16 = vpop.f32.mrb[1].mxu0 }
 0x13b   : > { %v452_v17 = vpop.f32.mrb[2].mxu0 }
 0x13c   : > { %v455_v19 = vmax.f32 %v450_v15, 0.0  ;;  %v737_v20 = vpop.f32.mrb[3].mxu0 }
 0x13e   : > { %494 = vst [vmem:[#allocation2] sm:$0xff] %v455_v19  ;;  %v463_v21 = vmul.f32 %v684_v18, %v455_v19 }
 0x140   : > { %464 = vadd.xlane.f32.xlu0 %v463_v21 }
 0x1cd   : > { %v465_v23 = vpop.xlane.xlu0 %464 }
 0x1ce   : > { %v473_v24 = vadd.f32 %v685_v22, %v465_v23 }
 0x1d0   : > { %v686_v25 = vmul.f32 -1.442695, %v473_v24 }
 0x1d2   : > { %854 = vpow2.f32 %v686_v25 }
 0x1dc   : > { %v855_v26 = vpop.eup %854 }
 0x1dd   : > { %v477_v27 = vadd.f32 1.0, %v855_v26 }
 0x1df   : > { %856 = vrcp.f32 %v477_v27 }
 0x1e9   : > { %v857_v28 = vpop.eup %856 }
 0x1ea   : > { %v481_v29 = vsel %vm480_vm1, %v857_v28, 0.0 }
 0x1eb   : > { %482 = vadd.xlane.f32.xlu0 %v481_v29 }
 0x278   : > { %v483_v30 = vpop.xlane.xlu0 %482 }
 0x279   : > { %v484_v31 = vrot.slane %v483_v30, 4 }
 0x27b   : > { %v485_v32 = vadd.f32 %v484_v31, %v483_v30 }
 0x27d   : > { %v486_v33 = vrot.slane %v485_v32, 2 }
 0x27f   : > { %v487_v34 = vadd.f32 %v486_v33, %v485_v32 }
 0x281   : > { %v488_v35 = vrot.slane %v487_v34, 1 }
 0x283   : > { %v489_v36 = vadd.f32 %v488_v35, %v487_v34 }
 0x285   : > { %797 = vpush %v489_v36 }
 0x2b6   : > { %s798_s17 = spop %797 }
 0x2b7   : > { %s493_s19 = smul.f32 0.125, %s798_s17 }
 0x2b9   : > { %p495_p4 = scmp.gt.f32.partialorder %s493_s19, 0.5 }
 0x2bb   : > { %s496_s20 = scalar_select %p495_p4, 1, 0 }
 0x2bd   : > { %498 = sst [smem:[#allocation3]] %s496_s20 }
 0x2be PF: > { %p687_p5 = scmp.ne.s32.totalorder %s995_s6, 4 }
 0x2bf   : > { %v504_v37 = vld [vmem:[%s1181_s5] sm:$0xff] (!%p687_p5)  ;;  %v505_v38 = vld [vmem:[%s1181_s5 + $0x8] sm:$0xff] (!%p687_p5)  ;;  %v506_v39 = vld [vmem:[%s1181_s5 + $0x10] sm:$0xff] (!%p687_p5)  ;;  %v930_v40 = vmov (!%p687_p5), 0.0|0.0   ;;  %vm931_vm2 = vmmov (!%p687_p5), 0   ;;  %v932_v43 = vmov (!%p687_p5), 0.0  }
 0x2c0   : > { %502 = sbr.rel (%p687_p5) target bundleno = 952 (0x3b8), region = 64  ;;  %773 = vmatprep.subr.bf16.mxu0 (!%p687_p5), %v930_v40  ;;  %v774_v41 = vpack.c.bf16 (!%p687_p5), %v505_v38, %v504_v37  ;;  %v507_v42 = vld [vmem:[%s1181_s5 + $0x18] sm:$0xff] (!%p687_p5)  ;;  %770 = vmatprep.mubr.msk.f32.mxu0 (!%p687_p5), %vm931_vm2, %v932_v43  ;;  %v508_v45 = vld [vmem:[%s1181_s5 + $0x20] sm:$0xff] (!%p687_p5)  ;;  %v509_v46 = vld [vmem:[%s1181_s5 + $0x28] sm:$0xff] (!%p687_p5)  ;;  %vm597_vm3 = vcmask (!%p687_p5), 7168  }
 0x2c1   : > { %v777_v44 = vpack.c.bf16 (!%p687_p5), %v507_v42, %v506_v39  ;;  %v780_v47 = vpack.c.bf16 (!%p687_p5), %v509_v46, %v508_v45  ;;  %v510_v48 = vld [vmem:[%s1181_s5 + $0x30] sm:$0xff] (!%p687_p5)  ;;  %v511_v49 = vld [vmem:[%s1181_s5 + $0x38] sm:$0xff] (!%p687_p5)  ;;  %v512_v51 = vld [vmem:[%s1181_s5 + $0x40] sm:$0xff] (!%p687_p5) }
 0x2c2   : > { %775 = vmatpush3.bf16.msra.mxu0 (!%p687_p5), %v774_v41  ;;  %v783_v50 = vpack.c.bf16 (!%p687_p5), %v511_v49, %v510_v48  ;;  %v513_v52 = vld [vmem:[%s1181_s5 + $0x48] sm:$0xff] (!%p687_p5)  ;;  %v514_v54 = vld [vmem:[%s1181_s5 + $0x50] sm:$0xff] (!%p687_p5)  ;;  %v515_v55 = vld [vmem:[%s1181_s5 + $0x58] sm:$0xff] (!%p687_p5) }
 0x2c3   : > { %776 = vmatprep.subr.bf16.mxu0 (!%p687_p5), %v930_v40  ;;  %v786_v53 = vpack.c.bf16 (!%p687_p5), %v513_v52, %v512_v51  ;;  %v789_v56 = vpack.c.bf16 (!%p687_p5), %v515_v55, %v514_v54  ;;  %v516_v57 = vld [vmem:[%s1181_s5 + $0x60] sm:$0xff] (!%p687_p5)  ;;  %v517_v58 = vld [vmem:[%s1181_s5 + $0x68] sm:$0xff] (!%p687_p5)  ;;  %v518_v60 = vld [vmem:[%s1181_s5 + $0x70] sm:$0xff] (!%p687_p5) }
 0x2c4   : > { %v792_v59 = vpack.c.bf16 (!%p687_p5), %v517_v58, %v516_v57  ;;  %v519_v61 = vld [vmem:[%s1181_s5 + $0x78] sm:$0xff] (!%p687_p5)  ;;  %v503_v63 = vld [vmem:[#allocation2] sm:$0xff] (!%p687_p5)  ;;  %v688_v0 = vld [vmem:[#allocation4] ss:$0 sm:$0xff] (!%p687_p5) }
 0x2c5   : > { %v795_v62 = vpack.c.bf16 (!%p687_p5), %v519_v61, %v518_v60 }
 0x2c6   : > { %778 = vmatpush3.bf16.msra.mxu0 (!%p687_p5), %v777_v44 }
 0x2c7   : > { %779 = vmatprep.subr.bf16.mxu0 %v930_v40 }
 0x2ca   : > { %781 = vmatpush3.bf16.msra.mxu0 %v780_v47 }
 0x2cb   : > { %782 = vmatprep.subr.bf16.mxu0 %v930_v40 }
 0x2ce   : > { %784 = vmatpush3.bf16.msra.mxu0 %v783_v50 }
 0x2cf   : > { %785 = vmatprep.subr.bf16.mxu0 %v930_v40 }
 0x2d2   : > { %787 = vmatpush3.bf16.msra.mxu0 %v786_v53 }
 0x2d3   : > { %788 = vmatprep.subr.bf16.mxu0 %v930_v40 }
 0x2d6   : > { %790 = vmatpush3.bf16.msra.mxu0 %v789_v56 }
 0x2d7   : > { %791 = vmatprep.subr.bf16.mxu0 %v930_v40 }
 0x2da   : > { %793 = vmatpush3.bf16.msra.mxu0 %v792_v59 }
 0x2db   : > { %794 = vmatprep.subr.bf16.mxu0 %v930_v40 }
 0x2de   : > { %796 = vmatpush3.bf16.msra.mxu0 %v795_v62 }
 0x2e1   : > { %771 = vmatmul.mubr.f32.vlgmr.msra.gmra.mrb[0].mxu0 %v503_v63 }
 0x3b4   : > { %v593_v1 = vpop.f32.mrb[0].mxu0 }
 0x3b5   : > { %v594_v2 = vadd.f32 %v688_v0, %v593_v1  ;;  %v772_v3 = vpop.f32.mrb[1].mxu0 }
 0x3b7   : > { %598 = vst.msk [vmem:[%s1183_s7] sm:$0xff] %vm597_vm3, %v594_v2 }
 0x3b8 PF: > { %p19_p6 = scmp.ge.s32.totalorder %s998_s30, 7   ;;  %s1187_s26 = smov %s914_s27 }
 0x3b9   : > { %s1188_s27 = smov %s918_s28  ;;  %s1189_s28 = smov %s1008_s10 }
 0x3ba   : > { %s1190_s29 = smov %s998_s30  ;;  %21 = sbr.rel (!%p19_p6) target bundleno = 6 (0x6), region = 107 }
 0x3c1   :  { %610 = vsyncpa [#allocation6], 1 }
 0x3c2   :  { %612 = vsyncpa [#allocation6 + $0x1], 1 }

</bundles_post_ra>
